<compile_context>
chip_gen: v6e
topology: v6e:2x2x1
jax: 0.10.0
libtpu: 0.0.40
codegen_flags: <defaults>
</compile_context>

<pallas_src>
import functools
import math

import numpy as np

import jax
import jax.numpy as jnp
from jax.experimental import pallas as pl
from jax.experimental.pallas import tpu as pltpu


def _option_a_shortcut_kernel(x_ref, sel_ref, o_ref, *, bn, c, co, pad):
    """One batch-chunk of the ResNet option-A shortcut.

    x_ref:   (bn*C,  H*W)     input slab, spatial dims flattened on the lane axis
    sel_ref: (H*W,  Ho*Wo)    0/1 selection matrix: sel[h*W+w, i*Wo+j] = 1 iff
                              h == 2*i and w == 2*j   (grid-invariant)
    o_ref:   (bn*Co, Ho*Wo)   output slab, Co = C + 2*pad
    """
    howo = o_ref.shape[-1]

    # Both spatial ::2 subsamples in one shot: a 0/1 selection matmul on the
    # otherwise-idle MXU keeps the minor dim lane-dense.  precision=HIGHEST
    # makes the result bit-exact for f32 inputs (each output element is
    # exactly one input element times 1.0, accumulated in f32).
    sub = jnp.dot(x_ref[...], sel_ref[...],
                  preferred_element_type=jnp.float32,
                  precision=jax.lax.Precision.HIGHEST)          # (bn*C, Ho*Wo)

    # Build the channel-padded slab in registers and emit a single aligned
    # full-block store (no masked / read-modify-write sublane stores).
    sub = sub.reshape(bn, c, howo)
    if pad > 0:
        z = jnp.zeros((bn, pad, howo), jnp.float32)
        padded = jnp.concatenate([z, sub, z], axis=1)           # (bn, Co, Ho*Wo)
    else:
        padded = sub
    o_ref[...] = padded.reshape(bn * co, howo).astype(o_ref.dtype)


@functools.lru_cache(maxsize=None)
def _selection_matrix_np(h, w, dtype_name):
    """0/1 matrix implementing the (::2, ::2) spatial subsample (cached)."""
    ho, wo = (h + 1) // 2, (w + 1) // 2
    hw, howo = h * w, ho * wo
    q = np.arange(hw)
    hq, wq = q // w, q % w
    keep = (hq % 2 == 0) & (wq % 2 == 0)
    p = (hq // 2) * wo + (wq // 2)
    sel = np.zeros((hw, howo), dtype=dtype_name)
    sel[q[keep], p[keep]] = 1
    return sel


def _lcm(a, b):
    return a * b // math.gcd(a, b)


def _pick_batch_block(n, c, co, hw, howo, itemsize):
    """Samples per grid step: multi-MiB blocks, >= 2 steps, 8-aligned rows."""
    per_sample = (c * hw + co * howo) * itemsize
    max_block_bytes = 8 << 20                       # in + out bytes per step
    bn = max(1, min(max_block_bytes // per_sample, -(-n // 2)))
    # Prefer >= 8 grid steps when each block still moves >= 2 MiB.
    bn8 = -(-n // 8)
    if bn8 * per_sample >= (2 << 20):
        bn = min(bn, bn8)
    # Round up so block row counts (bn*C, bn*Co) stay multiples of 8.
    align = _lcm(8 // math.gcd(c, 8), 8 // math.gcd(co, 8))
    bn = -(-bn // align) * align
    return bn


def lambda_layer(x_nchw, planes):
    """Forward of LambdaLayer(ResNet option-A shortcut lambda). Input/output NCHW."""
    pad = planes // 4
    n, c, h, w = x_nchw.shape
    ho, wo = (h + 1) // 2, (w + 1) // 2
    co = c + 2 * pad
    hw, howo = h * w, ho * wo
    dtype = x_nchw.dtype
    itemsize = jnp.dtype(dtype).itemsize

    if not jnp.issubdtype(dtype, jnp.floating):
        # TODO(synk): integer inputs would need a non-MXU selection path; only
        #             float dtypes (the ResNet use case) are translated here.
        raise NotImplementedError("lambda_layer Pallas kernel supports float dtypes only")

    # Grid-invariant selection matrix (built once per (h, w, dtype)).
    sel = _selection_matrix_np(h, w, str(jnp.dtype(dtype)))

    # Batch chunking + tail padding so n need not divide evenly.
    bn = _pick_batch_block(n, c, co, hw, howo, itemsize)
    n_pad = -(-n // bn) * bn
    grid = (n_pad // bn,)
    if n_pad != n:
        x_nchw = jnp.pad(x_nchw, ((0, n_pad - n), (0, 0), (0, 0), (0, 0)))

    # Free (contiguous) reshape: spatial dims onto the lane axis — no transpose.
    x2 = x_nchw.reshape(n_pad * c, hw)

    # VMEM budget: double-buffered in+out blocks + resident sel + slack,
    # capped at 48 MiB so it also fits v7x's 64 MiB physical VMEM.
    block_bytes = bn * (c * hw + co * howo) * itemsize
    sel_bytes = hw * howo * itemsize
    vmem_limit = int(min(48 << 20, max(32 << 20, 2 * block_bytes + sel_bytes + (8 << 20))))

    kernel = functools.partial(_option_a_shortcut_kernel,
                               bn=bn, c=c, co=co, pad=pad)
    cost = pl.CostEstimate(
        flops=2 * n_pad * c * hw * howo,
        transcendentals=0,
        bytes_accessed=(n_pad * c * hw + hw * howo + n_pad * co * howo) * itemsize)

    out2 = pl.pallas_call(
        kernel,
        out_shape=jax.ShapeDtypeStruct((n_pad * co, howo), dtype),
        grid=grid,
        in_specs=[
            pl.BlockSpec((bn * c, hw), lambda i: (i, 0)),
            pl.BlockSpec((hw, howo), lambda i: (0, 0)),   # invariant: fetched once
        ],
        out_specs=pl.BlockSpec((bn * co, howo), lambda i: (i, 0)),
        compiler_params=pltpu.CompilerParams(
            dimension_semantics=("parallel",),
            vmem_limit_bytes=vmem_limit),
        cost_estimate=cost,
    )(x2, jnp.asarray(sel))

    # Free reshape back to NCHW convention; drop any batch tail padding.
    out = out2.reshape(n_pad, co, ho, wo)
    return out[:n] if n_pad != n else out


if __name__ == "__main__":
    key = jax.random.PRNGKey(0)
    # Small ResNet-like stage: batch=5, 8 channels, 16x16 spatial, shortcut to
    # planes=16 (pad = 4 zero channels each side).  batch=5 is deliberately
    # not a multiple of the chosen batch block so both the multi-step grid and
    # the tail-padding path are exercised.
    x = jax.random.normal(key, (5, 8, 16, 16), dtype=jnp.float32)  # NCHW
    planes = 16

    y = jax.block_until_ready(jax.jit(lambda a: lambda_layer(a, planes))(x))

    # pure-JAX reference of the wrapped lambda (NCHW semantics)
    pad = planes // 4
    ref = x[:, :, ::2, ::2]
    ref = jnp.pad(ref, ((0, 0), (pad, pad), (0, 0), (0, 0)))

    assert y.shape == ref.shape, (y.shape, ref.shape)
    assert y.dtype == ref.dtype
    assert jnp.allclose(y, ref, rtol=1e-5, atol=1e-6), "mismatch vs reference"
    print("KERNEL_OK")
</pallas_src>

<mosaic_0001>
module attributes {stable_mosaic.version = 11 : i64} {
  func.func @_option_a_shortcut_kernel(%arg0: i32, %arg1: memref<24x256xf32, #tpu.memory_space<vmem>>, %arg2: memref<256x64xf32, #tpu.memory_space<vmem>>, %arg3: memref<48x64xf32, #tpu.memory_space<vmem>>) attributes {dimension_semantics = [#tpu.dimension_semantics<parallel>], iteration_bounds = array<i64: 2>, scalar_prefetch = 0 : i64, scratch_operands = 0 : i64, tpu.core_type = #tpu.core_type<tc>, window_params = [{transform_indices = @transform_0, window_bounds = array<i64: 24, 256>}, {pipeline_mode = #tpu.pipeline_mode<synchronous>, transform_indices = @transform_1, window_bounds = array<i64: 256, 64>}, {transform_indices = @transform_2, window_bounds = array<i64: 48, 64>}]} {
    %c0 = arith.constant 0 : index
    %c0_0 = arith.constant 0 : index
    %0 = vector.load %arg1[%c0, %c0_0] : memref<24x256xf32, #tpu.memory_space<vmem>>, vector<24x256xf32>
    %c0_1 = arith.constant 0 : index
    %c0_2 = arith.constant 0 : index
    %1 = vector.load %arg2[%c0_1, %c0_2] : memref<256x64xf32, #tpu.memory_space<vmem>>, vector<256x64xf32>
    %cst = arith.constant dense<0.000000e+00> : vector<24x64xf32>
    %2 = tpu.matmul %0, %1, %cst {dimension_numbers = #tpu.dot_dimension_numbers<[1], [0], [0], [1], [0, 0, 1, 1], [], []>, precision = #tpu.contract_precision<fp32>} : vector<24x256xf32>, vector<256x64xf32>, vector<24x64xf32> -> vector<24x64xf32>
    %3 = vector.shape_cast %2 : vector<24x64xf32> to vector<3x8x64xf32>
    %cst_3 = arith.constant 0.000000e+00 : f32
    %4 = vector.broadcast %cst_3 : f32 to vector<3x4x64xf32>
    %5 = tpu.concatenate %4, %3, %4 in 1 : vector<3x4x64xf32>, vector<3x8x64xf32>, vector<3x4x64xf32> -> vector<3x16x64xf32>
    %6 = vector.shape_cast %5 : vector<3x16x64xf32> to vector<48x64xf32>
    %c0_4 = arith.constant 0 : index
    %c0_5 = arith.constant 0 : index
    %7 = vector.load %arg3[%c0_4, %c0_5] : memref<48x64xf32, #tpu.memory_space<vmem>>, vector<48x64xf32>
    tpu.vector_store %arg3[%c0_4, %c0_5], %6 {strides = array<i32>} : memref<48x64xf32, #tpu.memory_space<vmem>>, vector<48x64xf32>,
    return
  }
  func.func @transform_0(%arg0: i32) -> (i32, i32) {
    %c0_i32 = arith.constant 0 : i32
    %c0_i32_0 = arith.constant 0 : i32
    return %arg0, %c0_i32 : i32, i32
  }
  func.func @transform_1(%arg0: i32) -> (i32, i32) {
    %c0_i32 = arith.constant 0 : i32
    %c0_i32_0 = arith.constant 0 : i32
    %c0_i32_1 = arith.constant 0 : i32
    return %c0_i32, %c0_i32_0 : i32, i32
  }
  func.func @transform_2(%arg0: i32) -> (i32, i32) {
    %c0_i32 = arith.constant 0 : i32
    %c0_i32_0 = arith.constant 0 : i32
    return %arg0, %c0_i32 : i32, i32
  }
}

</mosaic_0001>

<bundles_post_ra>
// kernel: _lambda_.1
= control target key start
LH: loop header
LB: loop body
LE: loop exit
PB: predicated region body
PF: predicated region fallthrough
CT: control target
= control target key end

     0   :  { %s1529_s9 = smov 0   ;;  %s2342_s0 = inlined_call_operand.vmem [shape: f32[48,256], index: 0, kind: input, shape index: {}]   ;;  %s2343_s1 = inlined_call_operand.vmem [shape: f32[256,64], index: 1, kind: input, shape index: {}]   ;;  %s2344_s2 = inlined_call_operand.vmem [shape: f32[96,64], index: 2, kind: output, shape index: {}]  }
   0x1 LB: > { %s1241_s10 = sadd.s32 4294967295, %s1512_s9   ;;  %p1245_p0 = scmp.ge.s32.totalorder %s1512_s9, 1  ;;  %s1512_s9 = sphi %s1529_s9, %s12_s9  }
   0x2   : > { %p114_p1 = scmp.lt.s32.totalorder %s1512_s9, 3 }
   0x4   : > { %p115_p2 = pnand %p1245_p0, %p114_p1 }
   0x6   : > { %118 = sbr.rel (%p115_p2) target bundleno = 348 (0x15c), region = 28 }
   0xb   : > { %v187_v0 = vld [vmem:[%s2343_s1 + $0xf8] sm:$0xff]  ;;  %v186_v2 = vld [vmem:[%s2343_s1 + $0xf0] sm:$0xff]  ;;  %v185_v7 = vld [vmem:[%s2343_s1 + $0xe8] sm:$0xff]  ;;  %s1709_s23 = smul.u32 3, %s1241_s10  ;;  %vm1171_vm0 = vcmask 1043456   ;;  %vm1178_vm1 = vcmask 523264  }
   0xc   : > { %v171_v1 = vld [vmem:[%s2343_s1 + $0x78] sm:$0xff]  ;;  %v1546_v3 = vand.u32 4294901760, %v187_v0  ;;  %v1550_v5 = vand.u32 4294901760, %v186_v2  ;;  %v170_v6 = vld [vmem:[%s2343_s1 + $0x70] sm:$0xff]  ;;  %v169_v8 = vld [vmem:[%s2343_s1 + $0x68] sm:$0xff]  ;;  %v1563_v10 = vand.u32 4294901760, %v185_v7 }
   0xd   : > { %v1548_v4 = vand.u32 4294901760, %v171_v1  ;;  %v1561_v9 = vand.u32 4294901760, %v170_v6  ;;  %v1565_v11 = vand.u32 4294901760, %v169_v8  ;;  %v184_v12 = vld [vmem:[%s2343_s1 + $0xe0] sm:$0xff]  ;;  %v1576_v14 = vld [vmem:[%s2343_s1 + $0xd8] sm:$0xff]  ;;  %v1597_v20 = vld [vmem:[%s2343_s1 + $0xd0] sm:$0xff] }
   0xe   : > { %v168_v13 = vld [vmem:[%s2343_s1 + $0x60] sm:$0xff]  ;;  %1252 = vmatprep.subr.mxu0 %v1546_v3  ;;  %v1579_v15 = vand.u32 4294901760, %v184_v12  ;;  %v1584_v17 = vand.u32 4294901760, %v1576_v14  ;;  %v1587_v18 = vsub.f32 %v187_v0, %v1546_v3  ;;  %v1592_v19 = vld [vmem:[%s2343_s1 + $0x58] sm:$0xff]  ;;  %v1602_v21 = vld [vmem:[%s2343_s1 + $0x50] sm:$0xff]  ;;  %v1612_v24 = vand.u32 4294901760, %v1597_v20 }
   0xf   : > { %v1581_v16 = vand.u32 4294901760, %v168_v13  ;;  %1253 = vmatpush3.msra.mxu0 %v1548_v4  ;;  %v1606_v22 = vand.u32 4294901760, %v1592_v19  ;;  %v1609_v23 = vsub.f32 %v171_v1, %v1548_v4  ;;  %v1615_v25 = vsub.f32 %v186_v2, %v1550_v5  ;;  %v1620_v26 = vld [vmem:[%s2343_s1 + $0xc8] sm:$0xff]  ;;  %v1630_v28 = vld [vmem:[%s2343_s1 + $0xc0] sm:$0xff]  ;;  %v1682_v46 = vld [vmem:[%s2343_s1 + $0xb8] sm:$0xff]  ;;  %p138_p3 = scmp.lt.s32.totalorder %s1709_s23, 5 }
  0x10   : > { %2426 = vst [vmem:[#allocation2_spill] sm:$0xff] %v1584_v17  ;;  %2428 = vst [vmem:[#allocation4_spill] sm:$0xff] %v1612_v24  ;;  %v1625_v27 = vld [vmem:[%s2343_s1 + $0x48] sm:$0xff]  ;;  %1254 = vmatprep.subr.mxu0 %v1550_v5  ;;  %v2358_v29 = vand.u32 4294901760, %v1587_v18  ;;  %v1635_v30 = vand.u32 4294901760, %v1602_v21  ;;  %v1638_v31 = vsub.f32 %v170_v6, %v1561_v9  ;;  %v1641_v32 = vand.u32 4294901760, %v1620_v26 }
  0x11   : > { %2427 = vst [vmem:[#allocation3_spill] sm:$0xff] %v1606_v22  ;;  %1255 = vmatpush3.msra.mxu0 %v1561_v9  ;;  %v2357_v33 = vand.u32 4294901760, %v1609_v23  ;;  %v2355_v34 = vand.u32 4294901760, %v1615_v25  ;;  %v1647_v35 = vsub.f32 %v185_v7, %v1563_v10  ;;  %v1650_v36 = vand.u32 4294901760, %v1625_v27  ;;  %v1655_v37 = vld [vmem:[%s2343_s1 + $0x40] sm:$0xff]  ;;  %v1695_v51 = vld [vmem:[%s2343_s1 + $0x38] sm:$0xff] }
  0x12   : > { %2429 = vst [vmem:[#allocation5_spill] sm:$0xff] %v1635_v30  ;;  %2430 = vst [vmem:[#allocation6_spill] sm:$0xff] %v1641_v32  ;;  %1256 = vmatprep.subr.mxu0 %v1563_v10  ;;  %v446_v38 = vsub.f32 %v1587_v18, %v2358_v29  ;;  %v2354_v39 = vand.u32 4294901760, %v1638_v31  ;;  %v1663_v40 = vsub.f32 %v169_v8, %v1565_v11  ;;  %v1666_v41 = vand.u32 4294901760, %v1630_v28  ;;  %v1705_v56 = vld [vmem:[%s2343_s1 + $0xb0] sm:$0xff]  ;;  %v1740_v2 = vld [vmem:[%s2343_s1 + $0xa8] sm:$0xff] }
  0x13   : > { %2431 = vst [vmem:[#allocation7_spill] sm:$0xff] %v1650_v36  ;;  %1257 = vmatpush3.msra.mxu0 %v1565_v11  ;;  %v334_v42 = vsub.f32 %v1609_v23, %v2357_v33  ;;  %v453_v43 = vsub.f32 %v1615_v25, %v2355_v34  ;;  %v2352_v44 = vand.u32 4294901760, %v1647_v35  ;;  %v1677_v45 = vsub.f32 %v184_v12, %v1579_v15  ;;  %v1724_v61 = vld [vmem:[%s2343_s1 + $0x30] sm:$0xff]  ;;  %s2538_s23 = smov (!%p138_p3, %s1709_s23), 5  ;;  %v1882_v33 = vld [vmem:[%s2343_s1 + $0x88] sm:$0xff]  ;;  %s144_s28 = smul.u32 6, %s1241_s10 }
  0x14   : > { %2432 = vst [vmem:[#allocation8_spill] sm:$0xff] %v1666_v41  ;;  %1258 = vmatprep.subr.mxu0 %v1579_v15  ;;  %v447_v47 = vand.u32 4294901760, %v446_v38  ;;  %v341_v48 = vsub.f32 %v1638_v31, %v2354_v39  ;;  %v2350_v49 = vand.u32 4294901760, %v1663_v40  ;;  %v1690_v50 = vand.u32 4294901760, %v1655_v37  ;;  %s1251_s18 = sshll.u32 %s2538_s23, 4 }
  0x15   : > { %1259 = vmatpush3.msra.mxu0 %v1581_v16  ;;  %v335_v52 = vand.u32 4294901760, %v334_v42  ;;  %v454_v53 = vand.u32 4294901760, %v453_v43  ;;  %v460_v54 = vsub.f32 %v1647_v35, %v2352_v44  ;;  %v2349_v55 = vand.u32 4294901760, %v1677_v45  ;;  %v1855_v44 = vld [vmem:[%s2343_s1 + $0x90] sm:$0xff]  ;;  %s1930_s25 = scalar_lea.vmem %s2342_s0, %s1251_s18  ;;  %p145_p4 = scmp.lt.s32.totalorder %s144_s28, 11 }
  0x16   : > { %2433 = vst [vmem:[#allocation9_spill] sm:$0xff] %v1690_v50  ;;  %1260 = vmatprep.subr.mxu0 %v1584_v17  ;;  %1293 = vmatprep.subr.mxu1 %v447_v47  ;;  %v342_v57 = vand.u32 4294901760, %v341_v48  ;;  %v348_v58 = vsub.f32 %v1663_v40, %v2350_v49  ;;  %v1716_v59 = vsub.f32 %v168_v13, %v1581_v16  ;;  %v1719_v60 = vand.u32 4294901760, %v1682_v46  ;;  %v1754_v13 = vld [vmem:[%s2343_s1 + $0x28] sm:$0xff]  ;;  %v1839_v49 = vld [vmem:[%s2343_s1 + $0x18] sm:$0xff] }
  0x17   : > { %1261 = vmatpush3.msra.mxu0 %v1606_v22  ;;  %1294 = vmatpush3.msra.mxu1 %v335_v52  ;;  %v461_v62 = vand.u32 4294901760, %v460_v54  ;;  %v467_v63 = vsub.f32 %v1677_v45, %v2349_v55  ;;  %v1732_v0 = vsub.f32 %v1576_v14, %v1584_v17  ;;  %v1735_v1 = vand.u32 4294901760, %v1695_v51  ;;  %v1781_v52 = vld [vmem:[%s2343_s1 + $0xa0] sm:$0xff]  ;;  %s2540_s28 = smov (!%p145_p4, %s144_s28), 11 }
  0x18   : > { %2434 = vst [vmem:[#allocation10_spill] sm:$0xff] %v1719_v60  ;;  %1262 = vmatprep.subr.mxu0 %v1612_v24  ;;  %1295 = vmatprep.subr.mxu1 %v454_v53  ;;  %v349_v6 = vand.u32 4294901760, %v348_v58  ;;  %v2348_v7 = vand.u32 4294901760, %v1716_v59  ;;  %v1746_v8 = vsub.f32 %v1592_v19, %v1606_v22  ;;  %v1749_v12 = vand.u32 4294901760, %v1705_v56  ;;  %s1248_s10 = sshll.u32 %s2540_s28, 3 }
  0x19   : > { %2435 = vst [vmem:[#allocation11_spill] sm:$0xff] %v1735_v1  ;;  %1263 = vmatpush3.msra.mxu0 %v1635_v30  ;;  %1296 = vmatpush3.msra.mxu1 %v342_v57  ;;  %v468_v14 = vand.u32 4294901760, %v467_v63  ;;  %v2345_v38 = vand.u32 4294901760, %v1732_v0  ;;  %v1760_v42 = vsub.f32 %v1597_v20, %v1612_v24  ;;  %v1763_v19 = vand.u32 4294901760, %v1724_v61  ;;  %s148_s3 = scalar_lea.vmem %s2344_s2, %s1248_s10 }
  0x1a   : > { %2436 = vst [vmem:[#allocation12_spill] sm:$0xff] %v1749_v12  ;;  %1264 = vmatprep.subr.mxu0 %v1641_v32  ;;  %1297 = vmatprep.subr.mxu1 %v461_v62  ;;  %v355_v43 = vsub.f32 %v1716_v59, %v2348_v7  ;;  %v2346_v47 = vand.u32 4294901760, %v1746_v8  ;;  %v1773_v48 = vsub.f32 %v1602_v21, %v1635_v30  ;;  %v1776_v20 = vand.u32 4294901760, %v1740_v2 }
  0x1b   : > { %2437 = vst [vmem:[#allocation13_spill] sm:$0xff] %v1763_v19  ;;  %1265 = vmatpush3.msra.mxu0 %v1650_v36  ;;  %1298 = vmatpush3.msra.mxu1 %v349_v6  ;;  %v474_v53 = vsub.f32 %v1732_v0, %v2345_v38  ;;  %v2347_v54 = vand.u32 4294901760, %v1760_v42  ;;  %v1790_v21 = vsub.f32 %v1620_v26, %v1641_v32  ;;  %v1793_v57 = vand.u32 4294901760, %v1754_v13  ;;  %v1807_v26 = vld [vmem:[%s2343_s1 + $0x20] sm:$0xff] }
  0x1c   : > { %2438 = vst [vmem:[#allocation14_spill] sm:$0xff] %v1776_v20  ;;  %1266 = vmatprep.subr.mxu0 %v1666_v41  ;;  %1299 = vmatprep.subr.mxu1 %v468_v14  ;;  %v356_v58 = vand.u32 4294901760, %v355_v43  ;;  %v362_v62 = vsub.f32 %v1746_v8, %v2346_v47  ;;  %v2351_v63 = vand.u32 4294901760, %v1773_v48  ;;  %v1802_v6 = vsub.f32 %v1625_v27, %v1650_v36  ;;  %v1820_v27 = vld [vmem:[%s2343_s1 + $0x98] sm:$0xff] }
  0x1d   : > { %2439 = vst [vmem:[#allocation15_spill] sm:$0xff] %v1793_v57  ;;  %1267 = vmatpush3.msra.mxu0 %v1690_v50  ;;  %v475_v38 = vand.u32 4294901760, %v474_v53  ;;  %v481_v14 = vsub.f32 %v1760_v42, %v2347_v54  ;;  %v2353_v43 = vand.u32 4294901760, %v1790_v21  ;;  %v1815_v47 = vand.u32 4294901760, %v1781_v52 }
  0x1e   : > { %1300 = vmatpush3.msra.mxu1 %v356_v58  ;;  %1268 = vmatprep.subr.mxu0 %v1719_v60  ;;  %v363_v53 = vand.u32 4294901760, %v362_v62  ;;  %v369_v54 = vsub.f32 %v1773_v48, %v2351_v63  ;;  %v2356_v7 = vand.u32 4294901760, %v1802_v6  ;;  %v1834_v55 = vsub.f32 %v1630_v28, %v1666_v41 }
  0x1f   : > { %2440 = vst [vmem:[#allocation16_spill] sm:$0xff] %v1815_v47  ;;  %1301 = vmatprep.subr.mxu1 %v475_v38  ;;  %1269 = vmatpush3.msra.mxu0 %v1735_v1  ;;  %v482_v58 = vand.u32 4294901760, %v481_v14  ;;  %v488_v62 = vsub.f32 %v1790_v21, %v2353_v43  ;;  %v1846_v63 = vand.u32 4294901760, %v1807_v26  ;;  %v1850_v28 = vsub.f32 %v1655_v37, %v1690_v50  ;;  %v1868_v37 = vld [vmem:[%s2343_s1 + $0x10] sm:$0xff] }
  0x20   : > { %1302 = vmatpush3.msra.mxu1 %v363_v53  ;;  %1270 = vmatprep.subr.mxu0 %v1749_v12  ;;  %v370_v38 = vand.u32 4294901760, %v369_v54  ;;  %v376_v14 = vsub.f32 %v1802_v6, %v2356_v7  ;;  %v2361_v43 = vand.u32 4294901760, %v1834_v55  ;;  %v1863_v39 = vand.u32 4294901760, %v1820_v27 }
  0x21   : > { %2441 = vst [vmem:[#allocation17_spill] sm:$0xff] %v1846_v63  ;;  %1303 = vmatprep.subr.mxu1 %v482_v58  ;;  %1271 = vmatpush3.msra.mxu0 %v1763_v19  ;;  %v489_v53 = vand.u32 4294901760, %v488_v62  ;;  %v2362_v54 = vand.u32 4294901760, %v1850_v28  ;;  %v1874_v34 = vsub.f32 %v1682_v46, %v1719_v60  ;;  %v1877_v7 = vand.u32 4294901760, %v1839_v49 }
  0x22   : > { %2442 = vst [vmem:[#allocation18_spill] sm:$0xff] %v1863_v39  ;;  %1304 = vmatpush3.msra.mxu1 %v370_v38  ;;  %1272 = vmatprep.subr.mxu0 %v1776_v20  ;;  %v377_v58 = vand.u32 4294901760, %v376_v14  ;;  %v495_v62 = vsub.f32 %v1834_v55, %v2361_v43  ;;  %v1891_v46 = vsub.f32 %v1695_v51, %v1735_v1  ;;  %v1894_v29 = vand.u32 4294901760, %v1855_v44  ;;  %v1911_v51 = vld [vmem:[%s2343_s1 + $0x8] sm:$0xff] }
  0x23   : > { %2443 = vst [vmem:[#allocation19_spill] sm:$0xff] %v1877_v7  ;;  %1305 = vmatprep.subr.mxu1 %v489_v53  ;;  %1273 = vmatpush3.msra.mxu0 %v1793_v57  ;;  %v383_v38 = vsub.f32 %v1850_v28, %v2362_v54  ;;  %v1903_v60 = vsub.f32 %v1705_v56, %v1749_v12  ;;  %v1906_v43 = vand.u32 4294901760, %v1868_v37  ;;  %v1920_v56 = vand.u32 4294901760, %v1882_v33  ;;  %v1925_v12 = vld [vmem:[%s2343_s1 + $0x80] sm:$0xff] }
  0x24   : > { %2444 = vst [vmem:[#allocation20_spill] sm:$0xff] %v1891_v46  ;;  %2445 = vst [vmem:[#allocation21_spill] sm:$0xff] %v1894_v29  ;;  %1306 = vmatpush3.msra.mxu1 %v377_v58  ;;  %1274 = vmatprep.subr.mxu0 %v1815_v47  ;;  %v496_v53 = vand.u32 4294901760, %v495_v62  ;;  %v1917_v14 = vsub.f32 %v1724_v61, %v1763_v19  ;;  %v2449_v62 = vand.u32 4294901760, %v1874_v34  ;;  %v2451_v1 = vand.u32 4294901760, %v1891_v46 }
  0x25   : > { %2446 = vst [vmem:[#allocation22_spill] sm:$0xff] %v1903_v60  ;;  %2447 = vst [vmem:[#allocation23_spill] sm:$0xff] %v1906_v43  ;;  %1275 = vmatpush3.msra.mxu0 %v1846_v63  ;;  %v384_v58 = vand.u32 4294901760, %v383_v38  ;;  %v2381_v54 = vand.u32 4294901760, %v1903_v60  ;;  %v1939_v19 = vsub.f32 %v1740_v2, %v1776_v20  ;;  %v1947_v41 = vand.u32 4294901760, %v1911_v51  ;;  %v1956_v2 = vld [vmem:[%s2343_s1] sm:$0xff] }
  0x26   : > { %2448 = vst [vmem:[#allocation24_spill] sm:$0xff] %v1920_v56  ;;  %v502_v61 = vsub.f32 %v1874_v34, %v2449_v62  ;;  %1307 = vmatprep.subr.mxu1 %v496_v53  ;;  %1276 = vmatprep.subr.mxu0 %v1863_v39  ;;  %v390_v50 = vsub.f32 %v1891_v46, %v2451_v1  ;;  %v1964_v20 = vand.u32 4294901760, %v1925_v12  ;;  %v2452_v36 = vand.u32 4294901760, %v1917_v14 }
  0x27   : > { %2450 = vst [vmem:[#allocation25_spill] sm:$0xff] %v1939_v19  ;;  %v1951_v62 = vsub.f32 %v1754_v13, %v1793_v57  ;;  %1308 = vmatpush3.msra.mxu1 %v384_v58  ;;  %1277 = vmatpush3.msra.mxu0 %v1877_v7  ;;  %v509_v1 = vsub.f32 %v1903_v60, %v2381_v54  ;;  %v151_v13 = vld [vmem:[%s1930_s25 + $0x8] sm:$0xff]  ;;  %v150_v54 = vld [vmem:[%s1930_s25] sm:$0xff]  ;;  %v2454_v30 = vand.u32 4294901760, %v1939_v19  ;;  %v1982_v24 = vand.u32 4294901760, %v1956_v2 }
  0x28   : > { %v503_v53 = vand.u32 4294901760, %v502_v61  ;;  %v391_v57 = vand.u32 4294901760, %v390_v50  ;;  %1278 = vmatprep.subr.mxu0 %v1894_v29  ;;  %v397_v58 = vsub.f32 %v1917_v14, %v2452_v36  ;;  %v1974_v32 = vsub.f32 %v1781_v52, %v1815_v47 }
  0x29   : > { %v510_v38 = vand.u32 4294901760, %v509_v1  ;;  %1279 = vmatpush3.msra.mxu0 %v1906_v43  ;;  %v516_v50 = vsub.f32 %v1939_v19, %v2454_v30  ;;  %v1986_v36 = vsub.f32 %v1807_v26, %v1846_v63  ;;  %v2455_v52 = vand.u32 4294901760, %v1951_v62 }
  0x2a   : > { %2453 = vst [vmem:[#allocation26_spill] sm:$0xff] %v1974_v32  ;;  %1309 = vmatprep.subr.mxu1 %v503_v53  ;;  %v398_v61 = vand.u32 4294901760, %v397_v58  ;;  %1280 = vmatprep.subr.mxu0 %v1920_v56  ;;  %v2390_v1 = vand.u32 4294901760, %v1974_v32  ;;  %v1993_v47 = vand.u32 4294901760, %v151_v13  ;;  %v2001_v26 = vand.u32 4294901760, %v150_v54 }
  0x2b   : > { %1310 = vmatpush3.msra.mxu1 %v391_v57  ;;  %v404_v53 = vsub.f32 %v1951_v62, %v2455_v52  ;;  %v517_v30 = vand.u32 4294901760, %v516_v50  ;;  %1281 = vmatpush3.msra.mxu0 %v1947_v41  ;;  %v2391_v19 = vand.u32 4294901760, %v1986_v36  ;;  %v1999_v57 = vsub.f32 %v1820_v27, %v1863_v39 }
  0x2c   : > { %2456 = vst [vmem:[#allocation27_spill] sm:$0xff] %v1993_v47  ;;  %1311 = vmatprep.subr.mxu1 %v510_v38  ;;  %2457 = vst [vmem:[#allocation28_spill] sm:$0xff] %v2001_v26  ;;  %1282 = vmatprep.subr.mxu0 %v1964_v20  ;;  %v523_v52 = vsub.f32 %v1974_v32, %v2390_v1  ;;  %v2008_v38 = vsub.f32 %v151_v13, %v1993_v47 }
  0x2d   : > { %1312 = vmatpush3.msra.mxu1 %v398_v61  ;;  %v405_v58 = vand.u32 4294901760, %v404_v53  ;;  %v2012_v50 = vsub.f32 %v1839_v49, %v1877_v7  ;;  %1283 = vmatpush3.msra.mxu0 %v1982_v24  ;;  %v411_v27 = vsub.f32 %v1986_v36, %v2391_v19  ;;  %v2020_v53 = vsub.f32 %v150_v54, %v2001_v26 }
  0x2e   : > { %1313 = vmatprep.subr.mxu1 %v517_v30  ;;  %v2024_v13 = vsub.f32 %v1855_v44, %v1894_v29  ;;  %v524_v1 = vand.u32 4294901760, %v523_v52  ;;  %v2396_v49 = vand.u32 4294901760, %v2008_v38  ;;  %1334 = vmatprep.subr.mxu0 %v1587_v18  ;;  %v2031_v19 = vsub.f32 %v1868_v37, %v1906_v43 }
  0x2f   : > { %1314 = vmatpush3.msra.mxu1 %v405_v58  ;;  %v2399_v30 = vand.u32 4294901760, %v2012_v50  ;;  %v412_v61 = vand.u32 4294901760, %v411_v27  ;;  %v2458_v54 = vand.u32 4294901760, %v1999_v57  ;;  %555 = vmatprep.mubr.f32.mxu1 %v1993_v47  ;;  %v2459_v58 = vand.u32 4294901760, %v2020_v53 }
  0x30   : > { %1315 = vmatprep.subr.mxu1 %v524_v1  ;;  %v287_v52 = vsub.f32 %v2008_v38, %v2396_v49  ;;  %v2460_v47 = vand.u32 4294901760, %v2024_v13  ;;  %v2058_v43 = vsub.f32 %v1911_v51, %v1947_v41  ;;  %v2461_v29 = vand.u32 4294901760, %v2031_v19 }
  0x31   : > { %v530_v7 = vsub.f32 %v1999_v57, %v2458_v54  ;;  %v418_v37 = vsub.f32 %v2012_v50, %v2399_v30  ;;  %v2048_v54 = vsub.f32 %v1882_v33, %v1920_v56  ;;  %1316 = vmatpush3.msra.mxu1 %v412_v61  ;;  %v293_v1 = vsub.f32 %v2020_v53, %v2459_v58 }
  0x32   : > { %v537_v49 = vsub.f32 %v2024_v13, %v2460_v47  ;;  %v288_v30 = vand.u32 4294901760, %v287_v52  ;;  %v425_v33 = vsub.f32 %v2031_v19, %v2461_v29  ;;  %v2406_v56 = vand.u32 4294901760, %v2058_v43 }
  0x33   : > { %v531_v44 = vand.u32 4294901760, %v530_v7  ;;  %v419_v27 = vand.u32 4294901760, %v418_v37  ;;  %v2407_v7 = vand.u32 4294901760, %v2048_v54  ;;  %v294_v61 = vand.u32 4294901760, %v293_v1  ;;  %v152_v1 = vld [vmem:[%s1930_s25 + $0x10] sm:$0xff] }
  0x34   : > { %v538_v58 = vand.u32 4294901760, %v537_v49  ;;  %v2067_v47 = vsub.f32 %v1925_v12, %v1964_v20  ;;  %289 = vmatprep.mubr.f32.mxu0 %v288_v30  ;;  %v426_v51 = vand.u32 4294901760, %v425_v33  ;;  %v2074_v52 = vsub.f32 %v1956_v2, %v1982_v24  ;;  %v153_v30 = vld [vmem:[%s1930_s25 + $0x18] sm:$0xff] }
  0x35   : > { %1317 = vmatprep.subr.mxu1 %v531_v44  ;;  %v544_v29 = vsub.f32 %v2048_v54, %v2407_v7  ;;  %295 = vmatmul.mubr.f32.vlgmr.msra.gmra.mxu0 %v294_v61  ;;  %v432_v49 = vsub.f32 %v2058_v43, %v2406_v56  ;;  %v2092_v61 = vand.u32 4294901760, %v153_v30  ;;  %v2465_v7 = vld [vmem:[#allocation4_spill] sm:$0xff] }
  0x36   : > { %1318 = vmatpush3.msra.mxu1 %v419_v27  ;;  %v2405_v12 = vand.u32 4294901760, %v2067_v47  ;;  %1335 = vmatpush3.msra.mxu0 %v1609_v23  ;;  %v2404_v37 = vand.u32 4294901760, %v2074_v52 }
  0x37   : > { %1319 = vmatprep.subr.mxu1 %v538_v58  ;;  %v545_v44 = vand.u32 4294901760, %v544_v29  ;;  %1336 = vmatprep.subr.mxu0 %v1615_v25  ;;  %v433_v2 = vand.u32 4294901760, %v432_v49  ;;  %2462 = vst [vmem:[#allocation29_spill] sm:$0xff] %v2092_v61  ;;  %v2096_v29 = vand.u32 4294901760, %v152_v1  ;;  %v155_v49 = vld [vmem:[%s1930_s25 + $0x28] sm:$0xff] }
  0x38   : > { %1320 = vmatpush3.msra.mxu1 %v426_v51  ;;  %v551_v27 = vsub.f32 %v2067_v47, %v2405_v12  ;;  %1337 = vmatpush3.msra.mxu0 %v1638_v31  ;;  %v439_v33 = vsub.f32 %v2074_v52, %v2404_v37  ;;  %v154_v37 = vld [vmem:[%s1930_s25 + $0x20] sm:$0xff]  ;;  %v2466_v12 = vld [vmem:[#allocation5_spill] sm:$0xff] }
  0x39   : > { %1321 = vmatprep.subr.mxu1 %v545_v44  ;;  %1338 = vmatprep.subr.mxu0 %v1647_v35  ;;  %2463 = vst [vmem:[#allocation30_spill] sm:$0xff] %v2096_v29  ;;  %v2102_v44 = vsub.f32 %v153_v30, %v2092_v61  ;;  %v2116_v30 = vand.u32 4294901760, %v154_v37 }
  0x3a   : > { %1322 = vmatpush3.msra.mxu1 %v433_v2  ;;  %v552_v58 = vand.u32 4294901760, %v551_v27  ;;  %1339 = vmatpush3.msra.mxu0 %v1663_v40  ;;  %v440_v51 = vand.u32 4294901760, %v439_v33  ;;  %v2107_v2 = vand.u32 4294901760, %v155_v49  ;;  %v2112_v27 = vsub.f32 %v152_v1, %v2096_v29 }
  0x3b   : > { %1340 = vmatprep.subr.mxu0 %v1677_v45  ;;  %v2408_v33 = vand.u32 4294901760, %v2102_v44 }
  0x3c   : > { %1323 = vmatprep.subr.mxu1 %v552_v58  ;;  %1341 = vmatpush3.msra.mxu0 %v1716_v59  ;;  %2464 = vst [vmem:[#allocation31_spill] sm:$0xff] %v2107_v2  ;;  %v2124_v58 = vsub.f32 %v155_v49, %v2107_v2  ;;  %v2413_v1 = vand.u32 4294901760, %v2112_v27 }
  0x3d   : > { %1324 = vmatpush3.msra.mxu1 %v440_v51  ;;  %1342 = vmatprep.subr.mxu0 %v1732_v0  ;;  %v2132_v51 = vsub.f32 %v154_v37, %v2116_v30  ;;  %v302_v49 = vsub.f32 %v2102_v44, %v2408_v33 }
  0x3e   : > { %557 = vmatmul.mubr.f32.vlgmr.msra.gmra.mxu1 %v2001_v26  ;;  %1375 = vmatprep.subr.mxu1 %v1546_v3  ;;  %v308_v37 = vsub.f32 %v2112_v27, %v2413_v1  ;;  %v2467_v26 = vld [vmem:[#allocation25_spill] sm:$0xff]  ;;  %v2469_v1 = vld [vmem:[#allocation6_spill] sm:$0xff] }
  0x3f   : > { %1343 = vmatpush3.msra.mxu0 %v1746_v8  ;;  %1376 = vmatpush3.msra.mxu1 %v1548_v4  ;;  %v2417_v56 = vand.u32 4294901760, %v2132_v51  ;;  %v303_v33 = vand.u32 4294901760, %v302_v49 }
  0x40   : > { %1344 = vmatprep.subr.mxu0 %v1760_v42  ;;  %1377 = vmatprep.subr.mxu1 %v1550_v5 }
  0x41   : > { %1345 = vmatpush3.msra.mxu0 %v1773_v48  ;;  %1378 = vmatpush3.msra.mxu1 %v1561_v9  ;;  %v323_v49 = vsub.f32 %v2132_v51, %v2417_v56  ;;  %v2475_v56 = vld [vmem:[#allocation12_spill] sm:$0xff] }
  0x42   : > { %1346 = vmatprep.subr.mxu0 %v1790_v21  ;;  %1379 = vmatprep.subr.mxu1 %v1563_v10 }
  0x43   : > { %1347 = vmatpush3.msra.mxu0 %v1802_v6  ;;  %1380 = vmatpush3.msra.mxu1 %v1565_v11 }
  0x44   : > { %1348 = vmatprep.subr.mxu0 %v1834_v55  ;;  %1381 = vmatprep.subr.mxu1 %v1579_v15 }
  0x45   : > { %1349 = vmatpush3.msra.mxu0 %v1850_v28  ;;  %1382 = vmatpush3.msra.mxu1 %v1581_v16 }
  0x46   : > { %1350 = vmatprep.subr.mxu0 %v1874_v34  ;;  %1383 = vmatprep.subr.mxu1 %v1584_v17 }
  0x47   : > { %1351 = vmatpush3.msra.mxu0 %v1891_v46  ;;  %1384 = vmatpush3.msra.mxu1 %v1606_v22  ;;  %v2468_v46 = vand.u32 4294901760, %v2124_v58  ;;  %v2470_v22 = vld [vmem:[#allocation7_spill] sm:$0xff] }
  0x48   : > { %1352 = vmatprep.subr.mxu0 %v1903_v60  ;;  %1385 = vmatprep.subr.mxu1 %v2465_v7  ;;  %v309_v60 = vand.u32 4294901760, %v308_v37  ;;  %v2473_v37 = vld [vmem:[#allocation10_spill] sm:$0xff] }
  0x49   : > { %1353 = vmatpush3.msra.mxu0 %v1917_v14  ;;  %1386 = vmatpush3.msra.mxu1 %v2466_v12  ;;  %v317_v17 = vsub.f32 %v2124_v58, %v2468_v46  ;;  %v2471_v12 = vld [vmem:[#allocation8_spill] sm:$0xff] }
  0x4a   : > { %1354 = vmatprep.subr.mxu0 %v2467_v26  ;;  %1387 = vmatprep.subr.mxu1 %v2469_v1  ;;  %v2472_v26 = vld [vmem:[#allocation9_spill] sm:$0xff] }
  0x4b   : > { %1355 = vmatpush3.msra.mxu0 %v1951_v62  ;;  %1388 = vmatpush3.msra.mxu1 %v2470_v22  ;;  %v318_v46 = vand.u32 4294901760, %v317_v17  ;;  %v2474_v22 = vld [vmem:[#allocation11_spill] sm:$0xff]  ;;  %v2477_v17 = vld [vmem:[#allocation14_spill] sm:$0xff] }
  0x4c   : > { %1356 = vmatprep.subr.mxu0 %v1974_v32  ;;  %1389 = vmatprep.subr.mxu1 %v2471_v12  ;;  %v324_v32 = vand.u32 4294901760, %v323_v49  ;;  %v2479_v49 = vld [vmem:[#allocation16_spill] sm:$0xff] }
  0x4d   : > { %304 = vmatprep.mubr.f32.mxu0 %v303_v33  ;;  %1357 = vmatpush3.msra.mxu0 %v1986_v36  ;;  %v2476_v33 = vld [vmem:[#allocation13_spill] sm:$0xff] }
  0x4e   : > { %1390 = vmatpush3.msra.mxu1 %v2472_v26  ;;  %310 = vmatmul.mubr.f32.gmra.mxu0 %v309_v60  ;;  %v2478_v60 = vld [vmem:[#allocation15_spill] sm:$0xff] }
  0x4f   : > { %1358 = vmatprep.subr.mxu0 %v1999_v57  ;;  %1391 = vmatprep.subr.mxu1 %v2473_v37 }
  0x50   : > { %1359 = vmatpush3.msra.mxu0 %v2012_v50  ;;  %1392 = vmatpush3.msra.mxu1 %v2474_v22 }
  0x51   : > { %1360 = vmatprep.subr.mxu0 %v2024_v13  ;;  %1393 = vmatprep.subr.mxu1 %v2475_v56 }
  0x52   : > { %319 = vmatprep.mubr.f32.mxu0 %v318_v46  ;;  %1361 = vmatpush3.msra.mxu0 %v2031_v19  ;;  %v2481_v46 = vand.u32 4294901760, %v1609_v23  ;;  %v2488_v23 = vand.u32 4294901760, %v1647_v35  ;;  %v2492_v35 = vand.u32 4294901760, %v1716_v59  ;;  %v2497_v59 = vand.u32 4294901760, %v2102_v44 }
  0x53   : > { %1394 = vmatpush3.msra.mxu1 %v2476_v33  ;;  %325 = vmatmul.mubr.f32.gmra.mxu0 %v324_v32  ;;  %v2480_v32 = vand.u32 4294901760, %v1587_v18  ;;  %v2487_v18 = vld [vmem:[#allocation24_spill] sm:$0xff] }
  0x54   : > { %562 = vmatprep.mubr.f32.mxu1 %v2092_v61  ;;  %1362 = vmatprep.subr.mxu0 %v2048_v54  ;;  %v2483_v61 = vand.u32 4294901760, %v1615_v25  ;;  %v2489_v25 = vand.u32 4294901760, %v1663_v40  ;;  %v2494_v40 = vand.u32 4294901760, %v1732_v0  ;;  %v2500_v0 = vand.u32 4294901760, %v1790_v21  ;;  %v2511_v21 = vld [vmem:[#allocation22_spill] sm:$0xff] }
  0x55   : > { %1395 = vmatprep.subr.mxu1 %v2477_v17  ;;  %564 = vmatmul.mubr.f32.gmra.mxu1 %v2096_v29  ;;  %v2482_v29 = vld [vmem:[#allocation19_spill] sm:$0xff] }
  0x56   : > { %1363 = vmatpush3.msra.mxu0 %v2058_v43  ;;  %1396 = vmatpush3.msra.mxu1 %v2478_v60 }
  0x57   : > { %1364 = vmatprep.subr.mxu0 %v2067_v47  ;;  %1397 = vmatprep.subr.mxu1 %v2479_v49 }
  0x58   : > { %1365 = vmatpush3.msra.mxu0 %v2074_v52  ;;  %706 = vmatprep.mubr.f32.mxu0 %v2008_v38 }
  0x59   : > { %1398 = vmatpush3.msra.mxu1 %v1846_v63  ;;  %569 = vmatprep.mubr.f32.mxu1 %v2107_v2  ;;  %v2484_v63 = vld [vmem:[#allocation21_spill] sm:$0xff]  ;;  %v2485_v2 = vld [vmem:[#allocation23_spill] sm:$0xff] }
  0x5a   : > { %709 = vmatmul.mubr.f32.vlgmr.msra.gmra.mxu0 %v2020_v53  ;;  %1399 = vmatprep.subr.mxu1 %v1863_v39  ;;  %v2486_v39 = vand.u32 4294901760, %v1638_v31  ;;  %v2491_v31 = vand.u32 4294901760, %v2008_v38  ;;  %v2496_v38 = vand.u32 4294901760, %v1760_v42  ;;  %v2506_v42 = vand.u32 4294901760, %v1874_v34 }
  0x5b   : > { %1416 = vmatprep.subr.mxu0 %v2480_v32  ;;  %571 = vmatmul.mubr.f32.gmra.mxu1 %v2116_v30 }
  0x5c   : > { %1417 = vmatpush3.msra.mxu0 %v2481_v46  ;;  %1400 = vmatpush3.msra.mxu1 %v2482_v29 }
  0x5d   : > { %1418 = vmatprep.subr.mxu0 %v2483_v61  ;;  %1401 = vmatprep.subr.mxu1 %v2484_v63  ;;  %v2490_v61 = vand.u32 4294901760, %v1677_v45  ;;  %v2495_v45 = vand.u32 4294901760, %v1746_v8  ;;  %v2504_v8 = vand.u32 4294901760, %v1850_v28  ;;  %v2514_v28 = vld [vmem:[#allocation5_spill] sm:$0xff] }
  0x5e   : > { %715 = vmatprep.mubr.f32.mxu0 %v2102_v44  ;;  %1402 = vmatpush3.msra.mxu1 %v2485_v2  ;;  %v2515_v44 = vld [vmem:[#allocation25_spill] sm:$0xff] }
  0x5f   : > { %1419 = vmatpush3.msra.mxu0 %v2486_v39  ;;  %1403 = vmatprep.subr.mxu1 %v2487_v18  ;;  %v2493_v39 = vand.u32 4294901760, %v2020_v53  ;;  %v2498_v53 = vand.u32 4294901760, %v1773_v48  ;;  %v2516_v34 = vand.u32 4294901760, %v2515_v44 }
  0x60   : > { %718 = vmatmul.mubr.f32.gmra.mxu0 %v2112_v27  ;;  %1420 = vmatprep.subr.mxu0 %v2488_v23 }
  0x61   : > { %1404 = vmatpush3.msra.mxu1 %v1947_v41  ;;  %1421 = vmatpush3.msra.mxu0 %v2489_v25 }
  0x62   : > { %1405 = vmatprep.subr.mxu1 %v1964_v20  ;;  %1422 = vmatprep.subr.mxu0 %v2490_v61 }
  0x63   : > { %724 = vmatprep.mubr.f32.mxu0 %v2124_v58  ;;  %1406 = vmatpush3.msra.mxu1 %v1982_v24 }
  0x64   : > { %831 = vmatprep.mubr.f32.mxu1 %v2491_v31  ;;  %1423 = vmatpush3.msra.mxu0 %v2492_v35 }
  0x65   : > { %835 = vmatmul.mubr.f32.vlgmr.msra.gmra.mxu1 %v2493_v39  ;;  %727 = vmatmul.mubr.f32.gmra.mxu0 %v2132_v51 }
  0x66   : > { %1424 = vmatprep.subr.mxu0 %v2494_v40  ;;  %1457 = vmatprep.subr.mxu1 %v1546_v3  ;;  %v2499_v3 = vand.u32 4294901760, %v2112_v27  ;;  %v2517_v27 = vand.u32 4294901760, %v1951_v62  ;;  %v2523_v62 = vand.u32 4294901760, %v2012_v50  ;;  %v2531_v50 = vld [vmem:[#allocation17_spill] sm:$0xff] }
  0x67   : > { %1425 = vmatpush3.msra.mxu0 %v2495_v45  ;;  %1458 = vmatpush3.msra.mxu1 %v1548_v4  ;;  %v2501_v4 = vand.u32 4294901760, %v1802_v6  ;;  %v2512_v6 = vand.u32 4294901760, %v2511_v21 }
  0x68   : > { %1426 = vmatprep.subr.mxu0 %v2496_v38  ;;  %1459 = vmatprep.subr.mxu1 %v1550_v5  ;;  %v2502_v5 = vand.u32 4294901760, %v1834_v55  ;;  %v2508_v55 = vld [vmem:[#allocation20_spill] sm:$0xff] }
  0x69   : > { %842 = vmatprep.mubr.f32.mxu1 %v2497_v59  ;;  %1427 = vmatpush3.msra.mxu0 %v2498_v53  ;;  %v2509_v48 = vand.u32 4294901760, %v2508_v55 }
  0x6a   : > { %1460 = vmatpush3.msra.mxu1 %v1561_v9  ;;  %1428 = vmatprep.subr.mxu0 %v2500_v0  ;;  %v2503_v9 = vand.u32 4294901760, %v2124_v58  ;;  %v2518_v58 = vld [vmem:[#allocation7_spill] sm:$0xff] }
  0x6b   : > { %846 = vmatmul.mubr.f32.gmra.mxu1 %v2499_v3  ;;  %1461 = vmatprep.subr.mxu1 %v1563_v10  ;;  %v2505_v10 = vand.u32 4294901760, %v2132_v51  ;;  %v2519_v51 = vld [vmem:[#allocation26_spill] sm:$0xff] }
  0x6c   : > { %1429 = vmatpush3.msra.mxu0 %v2501_v4  ;;  %1462 = vmatpush3.msra.mxu1 %v1565_v11  ;;  %v2507_v11 = vld [vmem:[#allocation2_spill] sm:$0xff]  ;;  %v2520_v32 = vand.u32 4294901760, %v2519_v51 }
  0x6d   : > { %1430 = vmatprep.subr.mxu0 %v2502_v5  ;;  %1463 = vmatprep.subr.mxu1 %v1579_v15  ;;  %v2510_v15 = vld [vmem:[#allocation3_spill] sm:$0xff] }
  0x6e   : > { %853 = vmatprep.mubr.f32.mxu1 %v2503_v9  ;;  %1431 = vmatpush3.msra.mxu0 %v2504_v8 }
  0x6f   : > { %1464 = vmatpush3.msra.mxu1 %v1581_v16  ;;  %1432 = vmatprep.subr.mxu0 %v2506_v42  ;;  %v2513_v16 = vand.u32 4294901760, %v1917_v14  ;;  %v2521_v14 = vand.u32 4294901760, %v1986_v36  ;;  %v2525_v36 = vand.u32 4294901760, %v2031_v19  ;;  %v2529_v19 = vand.u32 4294901760, %v2074_v52  ;;  %v2536_v52 = vld [vmem:[#allocation31_spill] sm:$0xff] }
  0x70   : > { %857 = vmatmul.mubr.f32.gmra.mxu1 %v2505_v10  ;;  %1465 = vmatprep.subr.mxu1 %v2507_v11 }
  0x71   : > { %1433 = vmatpush3.msra.mxu0 %v2509_v48  ;;  %1466 = vmatpush3.msra.mxu1 %v2510_v15 }
  0x72   : > { %1434 = vmatprep.subr.mxu0 %v2512_v6  ;;  %1467 = vmatprep.subr.mxu1 %v2465_v7  ;;  %v2522_v7 = vand.u32 4294901760, %v1999_v57  ;;  %v2526_v57 = vand.u32 4294901760, %v2048_v54  ;;  %v2533_v54 = vld [vmem:[#allocation18_spill] sm:$0xff] }
  0x73   : > { %1435 = vmatpush3.msra.mxu0 %v2513_v16  ;;  %1468 = vmatpush3.msra.mxu1 %v2514_v28 }
  0x74   : > { %1436 = vmatprep.subr.mxu0 %v2516_v34  ;;  %1469 = vmatprep.subr.mxu1 %v2469_v1  ;;  %v2524_v1 = vand.u32 4294901760, %v2024_v13  ;;  %v2532_v13 = vld [vmem:[#allocation28_spill] sm:$0xff] }
  0x75   : > { %1437 = vmatpush3.msra.mxu0 %v2517_v27  ;;  %1470 = vmatpush3.msra.mxu1 %v2518_v58 }
  0x76   : > { %1438 = vmatprep.subr.mxu0 %v2520_v32  ;;  %1471 = vmatprep.subr.mxu1 %v2471_v12 }
  0x77   : > { %1439 = vmatpush3.msra.mxu0 %v2521_v14  ;;  %1472 = vmatpush3.msra.mxu1 %v2472_v26  ;;  %v2527_v26 = vand.u32 4294901760, %v2058_v43  ;;  %v2534_v43 = vld [vmem:[#allocation29_spill] sm:$0xff] }
  0x78   : > { %1440 = vmatprep.subr.mxu0 %v2522_v7  ;;  %1473 = vmatprep.subr.mxu1 %v2473_v37 }
  0x79   : > { %1441 = vmatpush3.msra.mxu0 %v2523_v62  ;;  %1474 = vmatpush3.msra.mxu1 %v2474_v22  ;;  %v2528_v22 = vand.u32 4294901760, %v2067_v47  ;;  %v2535_v47 = vld [vmem:[#allocation30_spill] sm:$0xff] }
  0x7a   : > { %1442 = vmatprep.subr.mxu0 %v2524_v1  ;;  %1475 = vmatprep.subr.mxu1 %v2475_v56  ;;  %v2530_v56 = vld [vmem:[#allocation27_spill] sm:$0xff] }
  0x7b   : > { %1443 = vmatpush3.msra.mxu0 %v2525_v36  ;;  %1476 = vmatpush3.msra.mxu1 %v2476_v33 }
  0x7c   : > { %1444 = vmatprep.subr.mxu0 %v2526_v57  ;;  %1477 = vmatprep.subr.mxu1 %v2477_v17 }
  0x7d   : > { %1445 = vmatpush3.msra.mxu0 %v2527_v26  ;;  %1478 = vmatpush3.msra.mxu1 %v2478_v60 }
  0x7e   : > { %1446 = vmatprep.subr.mxu0 %v2528_v22  ;;  %1479 = vmatprep.subr.mxu1 %v2479_v49 }
  0x7f   : > { %1447 = vmatpush3.msra.mxu0 %v2529_v19  ;;  %1023 = vmatprep.mubr.f32.mxu0 %v2530_v56 }
  0x80   : > { %1480 = vmatpush3.msra.mxu1 %v2531_v50  ;;  %1025 = vmatmul.mubr.f32.vlgmr.msra.gmra.mxu0 %v2532_v13 }
  0x81   : > { %1481 = vmatprep.subr.mxu1 %v2533_v54  ;;  %1030 = vmatprep.mubr.f32.mxu0 %v2534_v43 }
  0x82   : > { %1482 = vmatpush3.msra.mxu1 %v2482_v29  ;;  %1141 = vmatprep.mubr.f32.mxu1 %v2530_v56 }
  0x83   : > { %1483 = vmatprep.subr.mxu1 %v2484_v63 }
  0x84   : > { %1484 = vmatpush3.msra.mxu1 %v2485_v2  ;;  %1032 = vmatmul.mubr.f32.gmra.mxu0 %v2535_v47 }
  0x85   : > { %1485 = vmatprep.subr.mxu1 %v2487_v18  ;;  %1037 = vmatprep.mubr.f32.mxu0 %v2536_v52 }
  0x86   : > { %1486 = vmatpush3.msra.mxu1 %v1947_v41 }
  0x87   : > { %1487 = vmatprep.subr.mxu1 %v1964_v20 }
  0x88   : > { %1488 = vmatpush3.msra.mxu1 %v1982_v24  ;;  %1039 = vmatmul.mubr.f32.gmra.mxu0 %v2116_v30 }
  0x89   : > { %1143 = vmatmul.mubr.f32.vlgmr.msra.gmra.mxu1 %v2532_v13 }
  0x8a   : > { %1148 = vmatprep.mubr.f32.mxu1 %v2534_v43 }
  0x8d   : > { %1150 = vmatmul.mubr.f32.gmra.mxu1 %v2535_v47 }
  0x8e   : > { %1155 = vmatprep.mubr.f32.mxu1 %v2536_v52 }
  0x91   : > { %1157 = vmatmul.mubr.f32.gmra.mxu1 %v2116_v30 }
  0xf5   : > { %v1284_v63 = vpop.f32.mrf.mxu0 }
  0xf7   : > { %v1285_v41 = vpop.f32.mrf.mxu0 }
  0xf8   : > { %v1286_v3 = vadd.f32 %v1285_v41, %v1284_v63 }
  0xfe   : > { %v1325_v29 = vpop.f32.mrf.mxu1 }
 0x100   : > { %v1326_v20 = vpop.f32.mrf.mxu1 }
 0x101   : > { %v1327_v38 = vadd.f32 %v1326_v20, %v1325_v29 }
 0x103   : > { %v559_v5 = vadd.f32 %v1327_v38, %v1286_v3 }
 0x10e   : > { %v1287_v12 = vpop.f32.mrf.mxu0 }
 0x110   : > { %v1288_v2 = vpop.f32.mrf.mxu0 }
 0x111   : > { %v1289_v9 = vadd.f32 %v1288_v2, %v1287_v12 }
 0x113   : > { %v1290_v37 = vpop.f32.mrf.mxu0 }
 0x115   : > { %v1328_v24 = vpop.f32.mrf.mxu1  ;;  %v1291_v33 = vpop.f32.mrf.mxu0 }
 0x116   : > { %v1292_v21 = vadd.f32 %v1291_v33, %v1290_v37 }
 0x117   : > { %v1329_v17 = vpop.f32.mrf.mxu1 }
 0x118   : > { %v1330_v8 = vadd.f32 %v1329_v17, %v1328_v24 }
 0x11a   : > { %v1366_v60 = vpop.f32.mrf.mxu0  ;;  %v566_v44 = vadd.f32 %v1330_v8, %v1289_v9 }
 0x11b   : > { %v1331_v49 = vpop.f32.mrf.mxu1 }
 0x11c   : > { %v1367_v46 = vpop.f32.mrf.mxu0 }
 0x11d   : > { %v1332_v18 = vpop.f32.mrf.mxu1  ;;  %v1368_v0 = vadd.f32 %v1367_v46, %v1366_v60 }
 0x11e   : > { %v1333_v6 = vadd.f32 %v1332_v18, %v1331_v49 }
 0x11f   : > { %v711_v55 = vadd.f32 %v1368_v0, %v559_v5 }
 0x120   : > { %v1369_v23 = vpop.f32.mrf.mxu0  ;;  %v573_v1 = vadd.f32 %v1333_v6, %v1292_v21 }
 0x122   : > { %v1370_v61 = vpop.f32.mrf.mxu0 }
 0x123   : > { %v1371_v48 = vadd.f32 %v1370_v61, %v1369_v23 }
 0x125   : > { %v1407_v25 = vpop.f32.mrf.mxu1  ;;  %v1372_v30 = vpop.f32.mrf.mxu0  ;;  %v720_v32 = vadd.f32 %v1371_v48, %v566_v44 }
 0x127   : > { %v1408_v31 = vpop.f32.mrf.mxu1  ;;  %v1373_v39 = vpop.f32.mrf.mxu0 }
 0x128   : > { %v1409_v10 = vadd.f32 %v1408_v31, %v1407_v25  ;;  %v1374_v58 = vadd.f32 %v1373_v39, %v1372_v30 }
 0x12a   : > { %v837_v34 = vadd.f32 %v1409_v10, %v711_v55  ;;  %v729_v56 = vadd.f32 %v1374_v58, %v573_v1 }
 0x12b   : > { %v1410_v35 = vpop.f32.mrf.mxu1 }
 0x12d   : > { %v1411_v40 = vpop.f32.mrf.mxu1 }
 0x12e   : > { %v1412_v27 = vadd.f32 %v1411_v40, %v1410_v35 }
 0x130   : > { %v1413_v59 = vpop.f32.mrf.mxu1  ;;  %v848_v26 = vadd.f32 %v1412_v27, %v720_v32 }
 0x132   : > { %v1414_v42 = vpop.f32.mrf.mxu1 }
 0x133   : > { %v1415_v22 = vadd.f32 %v1414_v42, %v1413_v59 }
 0x135   : > { %v859_v63 = vadd.f32 %v1415_v22, %v729_v56 }
 0x140   : > { %v1448_v45 = vpop.f32.mrf.mxu0 }
 0x142   : > { %v1449_v53 = vpop.f32.mrf.mxu0 }
 0x143   : > { %v1450_v15 = vadd.f32 %v1449_v53, %v1448_v45 }
 0x144   : > { %v1451_v4 = vpop.f32.mrf.mxu0 }
 0x145   : > { %v1027_v14 = vadd.f32 %v1450_v15, %v837_v34 }
 0x146   : > { %v1452_v11 = vpop.f32.mrf.mxu0 }
 0x147   : > { %v1453_v7 = vadd.f32 %v1452_v11, %v1451_v4 }
 0x148   : > { %v1454_v16 = vpop.f32.mrf.mxu0 }
 0x149   : > { %v1489_v28 = vpop.f32.mrf.mxu1  ;;  %v1034_v13 = vadd.f32 %v1453_v7, %v848_v26 }
 0x14a   : > { %v1455_v36 = vpop.f32.mrf.mxu0 }
 0x14b   : > { %v1490_v51 = vpop.f32.mrf.mxu1  ;;  %v1456_v54 = vadd.f32 %v1455_v36, %v1454_v16 }
 0x14c   : > { %v1491_v62 = vadd.f32 %v1490_v51, %v1489_v28 }
 0x14d   : > { %v1492_v57 = vpop.f32.mrf.mxu1  ;;  %v1041_v20 = vadd.f32 %v1456_v54, %v859_v63 }
 0x14e   : > { %v1145_v19 = vadd.f32 %v1491_v62, %v1027_v14 }
 0x14f   : > { %v1493_v50 = vpop.f32.mrf.mxu1 }
 0x150   : > { %v1165_v43 = vrot.slane %v1145_v19, 4  ;;  %v1494_v47 = vadd.f32 %v1493_v50, %v1492_v57 }
 0x151   : > { %v1495_v52 = vpop.f32.mrf.mxu1 }
 0x152   : > { %v1172_v41 = vsel %vm1171_vm0, 0.0, %v1165_v43  ;;  %v1175_v12 = vsel %vm1171_vm0, %v1165_v43, 0.0  ;;  %v1152_v29 = vadd.f32 %v1494_v47, %v1034_v13 }
 0x153   : > { %1179 = vst.msk [vmem:[%s148_s3] sm:$0xff] %vm1178_vm1, %v1172_v41  ;;  %1180 = vst.msk [vmem:[%s148_s3 + $0x8] sm:$0xff] %vm1178_vm1, %v1175_v12  ;;  %v1496_v2 = vpop.f32.mrf.mxu1 }
 0x154   : > { %v1166_v37 = vrot.slane %v1152_v29, 4  ;;  %v1497_v24 = vadd.f32 %v1496_v2, %v1495_v52 }
 0x156   : > { %v1173_v33 = vsel %vm1171_vm0, 0.0, %v1166_v37  ;;  %v1176_v17 = vsel %vm1171_vm0, %v1166_v37, 0.0  ;;  %v1159_v60 = vadd.f32 %v1497_v24, %v1041_v20 }
 0x157   : > { %1181 = vst.msk [vmem:[%s148_s3 + $0x10] sm:$0xff] %vm1178_vm1, %v1173_v33  ;;  %1182 = vst.msk [vmem:[%s148_s3 + $0x18] sm:$0xff] %vm1178_vm1, %v1176_v17 }
 0x158   : > { %v1167_v49 = vrot.slane %v1159_v60, 4 }
 0x15a   : > { %v1174_v46 = vsel %vm1171_vm0, 0.0, %v1167_v49  ;;  %v1177_v18 = vsel %vm1171_vm0, %v1167_v49, 0.0 }
 0x15b   : > { %1183 = vst.msk [vmem:[%s148_s3 + $0x20] sm:$0xff] %vm1178_vm1, %v1174_v46  ;;  %1184 = vst.msk [vmem:[%s148_s3 + $0x28] sm:$0xff] %vm1178_vm1, %v1177_v18 }
 0x15c PF: > { %s12_s9 = sadd.s32 1, %s1512_s9  }
 0x15d   : > { %p9_p5 = scmp.ge.s32.totalorder %s12_s9, 4  }
 0x15f   :  { %11 = sbr.rel (!%p9_p5) target bundleno = 1 (0x1), region = 58 }

</bundles_post_ra>
